<compile_context>
chip_gen: v5e
topology: v5e:2x2
jax: 0.10.0
libtpu: 0.0.40
codegen_flags: <defaults>
</compile_context>

<pallas_src>
import jax
import jax.numpy as jnp
from jax.experimental import pallas as pl
from jax.experimental.pallas import tpu as pltpu


IN_FEATURES = 28 * 28   # mnist
HIDDEN = 100
NUM_CLASS = 10


def fcnn_kernel(x_ref, w1_ref, b1_ref, w2_ref, b2_ref, w3_ref, b3_ref, o_ref):
    # x_ref: (TM, 784)            w1: (784, 100) bf16
    # w2: (100, 100) bf16         w3: (100, C) bf16
    # b*: (1, fan_out) f32        o_ref: (TM, C) f32
    x = x_ref[...].astype(jnp.bfloat16)                       # no-op if x is bf16
    h = jnp.dot(x, w1_ref[...], preferred_element_type=jnp.float32)
    h = jnp.maximum(h + b1_ref[...], 0.0)                     # Linear + ReLU (f32)
    h = jnp.dot(h.astype(jnp.bfloat16), w2_ref[...],
                preferred_element_type=jnp.float32)
    h = jnp.maximum(h + b2_ref[...], 0.0)                     # Linear + ReLU (f32)
    y = jnp.dot(h.astype(jnp.bfloat16), w3_ref[...],
                preferred_element_type=jnp.float32)
    o_ref[...] = (y + b3_ref[...]).astype(o_ref.dtype)        # final Linear


def _round_up(x, m):
    return ((x + m - 1) // m) * m


def fcnn_forward(x, w1, b1, w2, b2, w3, b3, *, tm=1024):
    """FCNNModel('mnist') forward pass.

    x:  (B, 1, 28, 28) f32 or bf16 (any layout flattening to 784 per row)
    w1: (784, 100), w2: (100, 100), w3: (100, num_class)  -- transposed vs torch
    b1: (100,), b2: (100,), b3: (num_class,)
    Returns logits of shape (B, num_class), f32.
    """
    B = x.shape[0]
    F = w1.shape[0]
    H = w1.shape[1]
    C = w3.shape[1]
    x_flat = x.reshape(B, F)          # matches torch x.view(B, -1); keep dtype

    # bf16 weights feed the MXU; biases stay f32 (bias-add / ReLU in f32).
    w1b = w1.astype(jnp.bfloat16)
    w2b = w2.astype(jnp.bfloat16)
    w3b = w3.astype(jnp.bfloat16)
    b1_2d = b1.astype(jnp.float32).reshape(1, H)
    b2_2d = b2.astype(jnp.float32).reshape(1, H)
    b3_2d = b3.astype(jnp.float32).reshape(1, C)

    if B <= 256:
        # Small / latency-bound batch: one monolithic block, one grid step.
        TM = B
    else:
        # >= 2 batch tiles so the "parallel" axis can shard across v7x's two
        # TensorCores; cap at `tm` (1024 keeps double-buffered x tiles well
        # under the scoped-VMEM defaults on all generations, even in f32).
        TM = min(tm, _round_up(pl.cdiv(B, 2), 256))

    grid = (pl.cdiv(B, TM),)          # ragged last block handled by Pallas
    resident = lambda i: (0, 0)       # weights/biases: same block every step

    out = pl.pallas_call(
        fcnn_kernel,
        out_shape=jax.ShapeDtypeStruct((B, C), jnp.float32),
        grid=grid,
        in_specs=[
            pl.BlockSpec((TM, F), lambda i: (i, 0)),      # x: tiled over batch
            pl.BlockSpec((F, H), resident),               # W1 (bf16, resident)
            pl.BlockSpec((1, H), resident),               # b1
            pl.BlockSpec((H, H), resident),               # W2
            pl.BlockSpec((1, H), resident),               # b2
            pl.BlockSpec((H, C), resident),               # W3
            pl.BlockSpec((1, C), resident),               # b3
        ],
        out_specs=pl.BlockSpec((TM, C), lambda i: (i, 0)),
        compiler_params=pltpu.CompilerParams(
            dimension_semantics=("parallel",)),           # megacore-friendly
    )(x_flat, w1b, b1_2d, w2b, b2_2d, w3b, b3_2d)

    return out


def _ref_bf16(x_flat, w1, b1, w2, b2, w3, b3):
    """Plain-JAX reference with the same bf16-operand / f32-accumulate scheme."""
    h = jnp.dot(x_flat.astype(jnp.bfloat16), w1.astype(jnp.bfloat16),
                preferred_element_type=jnp.float32)
    h = jnp.maximum(h + b1[None, :], 0.0)
    h = jnp.dot(h.astype(jnp.bfloat16), w2.astype(jnp.bfloat16),
                preferred_element_type=jnp.float32)
    h = jnp.maximum(h + b2[None, :], 0.0)
    y = jnp.dot(h.astype(jnp.bfloat16), w3.astype(jnp.bfloat16),
                preferred_element_type=jnp.float32)
    return y + b3[None, :]


def _ref_f32(x_flat, w1, b1, w2, b2, w3, b3):
    """Plain-JAX f32 reference of the PyTorch forward."""
    h = jnp.maximum(x_flat @ w1 + b1[None, :], 0.0)
    h = jnp.maximum(h @ w2 + b2[None, :], 0.0)
    return h @ w3 + b3[None, :]


if __name__ == "__main__":
    num_class = NUM_CLASS
    batch = 2

    key = jax.random.PRNGKey(0)
    kx, k1, k2, k3, kb1, kb2, kb3, kx2 = jax.random.split(key, 8)

    # Deterministic params (stored transposed vs PyTorch's (out, in) layout),
    # with a PyTorch-Linear-like uniform init scale.
    def uinit(k, shape, fan_in):
        bound = 1.0 / float(fan_in) ** 0.5
        return jax.random.uniform(k, shape, jnp.float32, -bound, bound)

    w1 = uinit(k1, (IN_FEATURES, HIDDEN), IN_FEATURES)
    b1 = uinit(kb1, (HIDDEN,), IN_FEATURES)
    w2 = uinit(k2, (HIDDEN, HIDDEN), HIDDEN)
    b2 = uinit(kb2, (HIDDEN,), HIDDEN)
    w3 = uinit(k3, (HIDDEN, num_class), HIDDEN)
    b3 = uinit(kb3, (num_class,), HIDDEN)

    # --- Small-batch (single-block) path -------------------------------------
    x = jax.random.normal(kx, (batch, 1, 28, 28), dtype=jnp.float32)
    out = jax.block_until_ready(fcnn_forward(x, w1, b1, w2, b2, w3, b3))
    assert out.shape == (batch, num_class)

    xf = x.reshape(batch, -1)
    ref_b = _ref_bf16(xf, w1, b1, w2, b2, w3, b3)
    ref_f = _ref_f32(xf, w1, b1, w2, b2, w3, b3)
    assert jnp.allclose(out, ref_b, atol=1e-2, rtol=1e-2), (
        float(jnp.max(jnp.abs(out - ref_b))))
    assert jnp.allclose(out, ref_f, atol=5e-2, rtol=5e-2), (
        float(jnp.max(jnp.abs(out - ref_f))))

    # --- Multi-tile + ragged-last-block path (B=300 -> TM=256, grid=2) -------
    B2 = 300
    x2 = jax.random.normal(kx2, (B2, 1, 28, 28), dtype=jnp.float32)
    out2 = jax.block_until_ready(fcnn_forward(x2, w1, b1, w2, b2, w3, b3))
    assert out2.shape == (B2, num_class)

    xf2 = x2.reshape(B2, -1)
    ref2 = _ref_bf16(xf2, w1, b1, w2, b2, w3, b3)
    assert jnp.allclose(out2, ref2, atol=1e-2, rtol=1e-2), (
        float(jnp.max(jnp.abs(out2 - ref2))))

    print("KERNEL_OK")
</pallas_src>

<mosaic_0001>
module attributes {stable_mosaic.version = 11 : i64} {
  func.func @fcnn_kernel(%arg0: i32, %arg1: memref<2x784xf32, #tpu.memory_space<vmem>>, %arg2: memref<784x100xbf16, #tpu.memory_space<vmem>>, %arg3: memref<1x100xf32, #tpu.memory_space<vmem>>, %arg4: memref<100x100xbf16, #tpu.memory_space<vmem>>, %arg5: memref<1x100xf32, #tpu.memory_space<vmem>>, %arg6: memref<100x10xbf16, #tpu.memory_space<vmem>>, %arg7: memref<1x10xf32, #tpu.memory_space<vmem>>, %arg8: memref<2x10xf32, #tpu.memory_space<vmem>>) attributes {dimension_semantics = [#tpu.dimension_semantics<parallel>], iteration_bounds = array<i64: 1>, scalar_prefetch = 0 : i64, scratch_operands = 0 : i64, tpu.core_type = #tpu.core_type<tc>, window_params = [{transform_indices = @transform_0, window_bounds = array<i64: 2, 784>}, {pipeline_mode = #tpu.pipeline_mode<synchronous>, transform_indices = @transform_1, window_bounds = array<i64: 784, 100>}, {pipeline_mode = #tpu.pipeline_mode<synchronous>, transform_indices = @transform_2, window_bounds = array<i64: 1, 100>}, {pipeline_mode = #tpu.pipeline_mode<synchronous>, transform_indices = @transform_3, window_bounds = array<i64: 100, 100>}, {pipeline_mode = #tpu.pipeline_mode<synchronous>, transform_indices = @transform_4, window_bounds = array<i64: 1, 100>}, {pipeline_mode = #tpu.pipeline_mode<synchronous>, transform_indices = @transform_5, window_bounds = array<i64: 100, 10>}, {pipeline_mode = #tpu.pipeline_mode<synchronous>, transform_indices = @transform_6, window_bounds = array<i64: 1, 10>}, {transform_indices = @transform_7, window_bounds = array<i64: 2, 10>}]} {
    %c0 = arith.constant 0 : index
    %c0_0 = arith.constant 0 : index
    %0 = vector.load %arg1[%c0, %c0_0] : memref<2x784xf32, #tpu.memory_space<vmem>>, vector<2x784xf32>
    %1 = arith.truncf %0 : vector<2x784xf32> to vector<2x784xbf16>
    %c0_1 = arith.constant 0 : index
    %c0_2 = arith.constant 0 : index
    %2 = vector.load %arg2[%c0_1, %c0_2] : memref<784x100xbf16, #tpu.memory_space<vmem>>, vector<784x100xbf16>
    %cst = arith.constant dense<0.000000e+00> : vector<2x100xf32>
    %3 = tpu.matmul %1, %2, %cst {dimension_numbers = #tpu.dot_dimension_numbers<[1], [0], [0], [1], [0, 0, 1, 1], [], []>} : vector<2x784xbf16>, vector<784x100xbf16>, vector<2x100xf32> -> vector<2x100xf32>
    %c0_3 = arith.constant 0 : index
    %c0_4 = arith.constant 0 : index
    %4 = vector.load %arg3[%c0_3, %c0_4] : memref<1x100xf32, #tpu.memory_space<vmem>>, vector<1x100xf32>
    %5 = vector.broadcast %4 : vector<1x100xf32> to vector<2x100xf32>
    %6 = arith.addf %3, %5 : vector<2x100xf32>
    %cst_5 = arith.constant 0.000000e+00 : f32
    %7 = vector.broadcast %cst_5 : f32 to vector<2x100xf32>
    %8 = arith.maximumf %6, %7 : vector<2x100xf32>
    %9 = arith.truncf %8 : vector<2x100xf32> to vector<2x100xbf16>
    %c0_6 = arith.constant 0 : index
    %c0_7 = arith.constant 0 : index
    %10 = vector.load %arg4[%c0_6, %c0_7] : memref<100x100xbf16, #tpu.memory_space<vmem>>, vector<100x100xbf16>
    %cst_8 = arith.constant dense<0.000000e+00> : vector<2x100xf32>
    %11 = tpu.matmul %9, %10, %cst_8 {dimension_numbers = #tpu.dot_dimension_numbers<[1], [0], [0], [1], [0, 0, 1, 1], [], []>} : vector<2x100xbf16>, vector<100x100xbf16>, vector<2x100xf32> -> vector<2x100xf32>
    %c0_9 = arith.constant 0 : index
    %c0_10 = arith.constant 0 : index
    %12 = vector.load %arg5[%c0_9, %c0_10] : memref<1x100xf32, #tpu.memory_space<vmem>>, vector<1x100xf32>
    %13 = vector.broadcast %12 : vector<1x100xf32> to vector<2x100xf32>
    %14 = arith.addf %11, %13 : vector<2x100xf32>
    %cst_11 = arith.constant 0.000000e+00 : f32
    %15 = vector.broadcast %cst_11 : f32 to vector<2x100xf32>
    %16 = arith.maximumf %14, %15 : vector<2x100xf32>
    %17 = arith.truncf %16 : vector<2x100xf32> to vector<2x100xbf16>
    %c0_12 = arith.constant 0 : index
    %c0_13 = arith.constant 0 : index
    %18 = vector.load %arg6[%c0_12, %c0_13] : memref<100x10xbf16, #tpu.memory_space<vmem>>, vector<100x10xbf16>
    %cst_14 = arith.constant dense<0.000000e+00> : vector<2x10xf32>
    %19 = tpu.matmul %17, %18, %cst_14 {dimension_numbers = #tpu.dot_dimension_numbers<[1], [0], [0], [1], [0, 0, 1, 1], [], []>} : vector<2x100xbf16>, vector<100x10xbf16>, vector<2x10xf32> -> vector<2x10xf32>
    %c0_15 = arith.constant 0 : index
    %c0_16 = arith.constant 0 : index
    %20 = vector.load %arg7[%c0_15, %c0_16] : memref<1x10xf32, #tpu.memory_space<vmem>>, vector<1x10xf32>
    %21 = vector.broadcast %20 : vector<1x10xf32> to vector<2x10xf32>
    %22 = arith.addf %19, %21 : vector<2x10xf32>
    %c0_17 = arith.constant 0 : index
    %c0_18 = arith.constant 0 : index
    %23 = vector.load %arg8[%c0_17, %c0_18] : memref<2x10xf32, #tpu.memory_space<vmem>>, vector<2x10xf32>
    tpu.vector_store %arg8[%c0_17, %c0_18], %22 {strides = array<i32>} : memref<2x10xf32, #tpu.memory_space<vmem>>, vector<2x10xf32>,
    return
  }
  func.func @transform_0(%arg0: i32) -> (i32, i32) {
    %c0_i32 = arith.constant 0 : i32
    %c0_i32_0 = arith.constant 0 : i32
    return %arg0, %c0_i32 : i32, i32
  }
  func.func @transform_1(%arg0: i32) -> (i32, i32) {
    %c0_i32 = arith.constant 0 : i32
    %c0_i32_0 = arith.constant 0 : i32
    %c0_i32_1 = arith.constant 0 : i32
    return %c0_i32, %c0_i32_0 : i32, i32
  }
  func.func @transform_2(%arg0: i32) -> (i32, i32) {
    %c0_i32 = arith.constant 0 : i32
    %c0_i32_0 = arith.constant 0 : i32
    %c0_i32_1 = arith.constant 0 : i32
    return %c0_i32, %c0_i32_0 : i32, i32
  }
  func.func @transform_3(%arg0: i32) -> (i32, i32) {
    %c0_i32 = arith.constant 0 : i32
    %c0_i32_0 = arith.constant 0 : i32
    %c0_i32_1 = arith.constant 0 : i32
    return %c0_i32, %c0_i32_0 : i32, i32
  }
  func.func @transform_4(%arg0: i32) -> (i32, i32) {
    %c0_i32 = arith.constant 0 : i32
    %c0_i32_0 = arith.constant 0 : i32
    %c0_i32_1 = arith.constant 0 : i32
    return %c0_i32, %c0_i32_0 : i32, i32
  }
  func.func @transform_5(%arg0: i32) -> (i32, i32) {
    %c0_i32 = arith.constant 0 : i32
    %c0_i32_0 = arith.constant 0 : i32
    %c0_i32_1 = arith.constant 0 : i32
    return %c0_i32, %c0_i32_0 : i32, i32
  }
  func.func @transform_6(%arg0: i32) -> (i32, i32) {
    %c0_i32 = arith.constant 0 : i32
    %c0_i32_0 = arith.constant 0 : i32
    %c0_i32_1 = arith.constant 0 : i32
    return %c0_i32, %c0_i32_0 : i32, i32
  }
  func.func @transform_7(%arg0: i32) -> (i32, i32) {
    %c0_i32 = arith.constant 0 : i32
    %c0_i32_0 = arith.constant 0 : i32
    return %arg0, %c0_i32 : i32, i32
  }
}

</mosaic_0001>

<bundles_post_ra>
// kernel: tpu_custom_call.1
= control target key start
LH: loop header
LB: loop body
LE: loop exit
PB: predicated region body
PF: predicated region fallthrough
CT: control target
= control target key end

     0   :  { %s1307_s0 = inlined_call_operand.vmem [shape: f32[2,784], index: 0, kind: input, shape index: {}]   ;;  %s1308_s1 = inlined_call_operand.vmem [shape: bf16[784,100], index: 1, kind: input, shape index: {}]   ;;  %s1309_s2 = inlined_call_operand.vmem [shape: f32[1,100], index: 2, kind: input, shape index: {}]   ;;  %s1310_s3 = inlined_call_operand.vmem [shape: bf16[100,100], index: 3, kind: input, shape index: {}]   ;;  %s1311_s4 = inlined_call_operand.vmem [shape: f32[1,100], index: 4, kind: input, shape index: {}]   ;;  %s1312_s5 = inlined_call_operand.vmem [shape: bf16[100,10], index: 5, kind: input, shape index: {}]   ;;  %s1313_s6 = inlined_call_operand.vmem [shape: f32[1,10], index: 6, kind: input, shape index: {}]   ;;  %s1314_s7 = inlined_call_operand.hbm [shape: f32[2,10], index: 7, kind: output, shape index: {}]  }
   0x1   :  { %v975_v0 = vld [vmem:[%s1308_s1 + $0x38] sm:$0xff]  ;;  %v974_v3 = vld [vmem:[%s1308_s1 + $0x30] sm:$0xff]  ;;  %v973_v8 = vld [vmem:[%s1308_s1 + $0x28] sm:$0xff] }
   0x2   :  { %v983_v1 = vld [vmem:[%s1308_s1 + $0x78] sm:$0xff]  ;;  %456 = vmatpush.bf16.msra.mxu0 %v975_v0  ;;  %v982_v4 = vld [vmem:[%s1308_s1 + $0x70] sm:$0xff]  ;;  %v981_v9 = vld [vmem:[%s1308_s1 + $0x68] sm:$0xff] }
   0x3   :  { %v991_v2 = vld [vmem:[%s1308_s1 + $0xb8] sm:$0xff]  ;;  %469 = vmatpush.bf16.msra.mxu1 %v983_v1  ;;  %v990_v5 = vld [vmem:[%s1308_s1 + $0xb0] sm:$0xff]  ;;  %v989_v10 = vld [vmem:[%s1308_s1 + $0xa8] sm:$0xff] }
   0x4   :  { %482 = vmatpush.bf16.msra.mxu2 %v991_v2  ;;  %v999_v6 = vld [vmem:[%s1308_s1 + $0xf8] sm:$0xff]  ;;  %v998_v7 = vld [vmem:[%s1308_s1 + $0xf0] sm:$0xff]  ;;  %v997_v11 = vld [vmem:[%s1308_s1 + $0xe8] sm:$0xff] }
   0x5   :  { %495 = vmatpush.bf16.msra.mxu3 %v999_v6  ;;  %v972_v12 = vld [vmem:[%s1308_s1 + $0x20] sm:$0xff]  ;;  %v971_v17 = vld [vmem:[%s1308_s1 + $0x18] sm:$0xff]  ;;  %v29_v19 = vld [vmem:[%s1307_s0 + $0x8] sm:$0x3f] }
   0x6   :  { %457 = vmatpush.bf16.msra.mxu0 %v974_v3  ;;  %v980_v13 = vld [vmem:[%s1308_s1 + $0x60] sm:$0xff]  ;;  %v979_v18 = vld [vmem:[%s1308_s1 + $0x58] sm:$0xff]  ;;  %34 = vst [vmem:[#allocation1 + $0x20] ss:$4 sm:$0xff] %v29_v19 }
   0x7   :  { %470 = vmatpush.bf16.msra.mxu1 %v982_v4  ;;  %v988_v14 = vld [vmem:[%s1308_s1 + $0xa0] sm:$0xff]  ;;  %v987_v20 = vld [vmem:[%s1308_s1 + $0x98] sm:$0xff] }
   0x8   :  { %483 = vmatpush.bf16.msra.mxu2 %v990_v5  ;;  %v28_v15 = vld [vmem:[%s1307_s0] sm:$0xff] }
   0x9   :  { %496 = vmatpush.bf16.msra.mxu3 %v998_v7  ;;  %32 = vst [vmem:[#allocation1] ss:$4 sm:$0xff] %v28_v15  ;;  %v996_v16 = vld [vmem:[%s1308_s1 + $0xe0] sm:$0xff] }
   0xa   :  { %458 = vmatpush.bf16.msra.mxu0 %v973_v8 }
   0xb   :  { %471 = vmatpush.bf16.msra.mxu1 %v981_v9 }
   0xc   :  { %484 = vmatpush.bf16.msra.mxu2 %v989_v10 }
   0xd   :  { %497 = vmatpush.bf16.msra.mxu3 %v997_v11 }
   0xe   :  { %459 = vmatpush.bf16.msra.mxu0 %v972_v12 }
   0xf   :  { %472 = vmatpush.bf16.msra.mxu1 %v980_v13 }
  0x10   :  { %485 = vmatpush.bf16.msra.mxu2 %v988_v14 }
  0x11   :  { %12 = vsyncpa [#allocation3], 0  ;;  %498 = vmatpush.bf16.msra.mxu3 %v996_v16  ;;  %v995_v21 = vld [vmem:[%s1308_s1 + $0xd8] sm:$0xff]  ;;  %v970_v22 = vld [vmem:[%s1308_s1 + $0x10] sm:$0xff]  ;;  %vm452_vm0 = vcmask 130048   ;;  %vm609_vm1 = vcmask 1041408  }
  0x12   :  { %460 = vmatpush.bf16.msra.mxu0 %v971_v17  ;;  %v978_v23 = vld [vmem:[%s1308_s1 + $0x50] sm:$0xff]  ;;  %v969_v26 = vld [vmem:[%s1308_s1 + $0x8] sm:$0xff]  ;;  %v968_v29 = vld [vmem:[%s1308_s1] sm:$0xff]  ;;  %vm605_vm2 = vcmask 818176   ;;  %s1059_s14 = smov [#allocation2]   ;;  %vm703_vm3 = vcmask 74752  }
  0x13   :  { %473 = vmatpush.bf16.msra.mxu1 %v979_v18  ;;  %v986_v24 = vld [vmem:[%s1308_s1 + $0x90] sm:$0xff]  ;;  %v977_v27 = vld [vmem:[%s1308_s1 + $0x48] sm:$0xff]  ;;  %v976_v30 = vld [vmem:[%s1308_s1 + $0x40] sm:$0xff]  ;;  %s710_s15 = sshll.u32 %s1059_s14, 4  ;;  %s711_s15 = int_to_ptr.vmem [resolvable:$true] %s710_s15 }
  0x14   :  { %486 = vmatpush.bf16.msra.mxu2 %v987_v20  ;;  %v994_v25 = vld [vmem:[%s1308_s1 + $0xd0] sm:$0xff]  ;;  %v985_v28 = vld [vmem:[%s1308_s1 + $0x88] sm:$0xff]  ;;  %v35_v32 = vld.sshfl [vmem:[#allocation1] sm:$0xff pattern:$0x73625140] }
  0x15   :  { %499 = vmatpush.bf16.msra.mxu3 %v995_v21  ;;  %v993_v31 = vld [vmem:[%s1308_s1 + $0xc8] sm:$0xff]  ;;  %v1007_v34 = vld [vmem:[%s1308_s1 + $0x138] sm:$0xff]  ;;  %v984_v36 = vld [vmem:[%s1308_s1 + $0x80] sm:$0xff]  ;;  %v49_v38 = vpack.c.bf16 %v35_v32, %v35_v32 }
  0x16   :  { %461 = vmatpush.bf16.msra.mxu0 %v970_v22  ;;  %v36_v33 = vld.sshfl [vmem:[#allocation1 + $0x8] sm:$0xff pattern:$0x73625140]  ;;  %v1015_v35 = vld [vmem:[%s1308_s1 + $0x178] sm:$0xff]  ;;  %v992_v40 = vld [vmem:[%s1308_s1 + $0xc0] sm:$0xff] }
  0x17   :  { %474 = vmatpush.bf16.msra.mxu1 %v978_v23  ;;  %v37_v37 = vld.sshfl [vmem:[#allocation1 + $0x10] sm:$0xff pattern:$0x73625140]  ;;  %v50_v39 = vpack.c.bf16 %v36_v33, %v36_v33  ;;  %v1016_v41 = vld [vmem:[%s1308_s1 + $0x180] sm:$0xff]  ;;  %v1005_v47 = vld [vmem:[%s1308_s1 + $0x128] sm:$0xff] }
  0x18   :  { %487 = vmatpush.bf16.msra.mxu2 %v986_v24  ;;  %v38_v42 = vld.sshfl [vmem:[#allocation1 + $0x18] sm:$0xff pattern:$0x73625140]  ;;  %v1006_v43 = vld [vmem:[%s1308_s1 + $0x130] sm:$0xff]  ;;  %v51_v45 = vpack.c.bf16 %v37_v37, %v37_v37  ;;  %v1013_v48 = vld [vmem:[%s1308_s1 + $0x168] sm:$0xff] }
  0x19   :  { %500 = vmatpush.bf16.msra.mxu3 %v994_v25  ;;  %v1014_v44 = vld [vmem:[%s1308_s1 + $0x170] sm:$0xff]  ;;  %v52_v46 = vpack.c.bf16 %v38_v42, %v38_v42  ;;  %v1004_v49 = vld [vmem:[%s1308_s1 + $0x120] sm:$0xff]  ;;  %v1003_v51 = vld [vmem:[%s1308_s1 + $0x118] sm:$0xff] }
  0x1a   :  { %462 = vmatpush.bf16.msra.mxu0 %v969_v26  ;;  %v1012_v50 = vld [vmem:[%s1308_s1 + $0x160] sm:$0xff]  ;;  %v1011_v52 = vld [vmem:[%s1308_s1 + $0x158] sm:$0xff]  ;;  %v41_v53 = vld.sshfl [vmem:[#allocation1 + $0x30] sm:$0xff pattern:$0x73625140] }
  0x1b   :  { %475 = vmatpush.bf16.msra.mxu1 %v977_v27  ;;  %v1002_v54 = vld [vmem:[%s1308_s1 + $0x110] sm:$0xff]  ;;  %v55_v56 = vpack.c.bf16 %v41_v53, %v41_v53  ;;  %v1001_v57 = vld [vmem:[%s1308_s1 + $0x108] sm:$0xff]  ;;  %v1000_v59 = vld [vmem:[%s1308_s1 + $0x100] sm:$0xff] }
  0x1c   :  { %488 = vmatpush.bf16.msra.mxu2 %v985_v28  ;;  %v1010_v55 = vld [vmem:[%s1308_s1 + $0x150] sm:$0xff]  ;;  %v1009_v58 = vld [vmem:[%s1308_s1 + $0x148] sm:$0xff]  ;;  %v1008_v60 = vld [vmem:[%s1308_s1 + $0x140] sm:$0xff] }
  0x1d   :  { %501 = vmatpush.bf16.msra.mxu3 %v993_v31  ;;  %v39_v61 = vld.sshfl [vmem:[#allocation1 + $0x20] sm:$0xff pattern:$0x73625140]  ;;  %v40_v62 = vld.sshfl [vmem:[#allocation1 + $0x28] sm:$0xff pattern:$0x73625140] }
  0x1e   :  { %463 = vmatpush.bf16.msra.mxu0 %v968_v29  ;;  %v53_v63 = vpack.c.bf16 %v39_v61, %v39_v61  ;;  %v54_v0 = vpack.c.bf16 %v40_v62, %v40_v62  ;;  %v561_v1 = vld [vmem:[%s1310_s3 + $0x30] sm:$0x3]  ;;  %v1022_v9 = vld [vmem:[%s1310_s3 + $0x28] sm:$0xff]  ;;  %v1021_v10 = vld [vmem:[%s1310_s3 + $0x20] sm:$0xff] }
  0x1f   :  { %476 = vmatpush.bf16.msra.mxu1 %v976_v30  ;;  %v591_v2 = vunpack.c.l.b16 %v561_v1  ;;  %v640_v4 = vld [vmem:[%s1312_s5 + $0x30] sm:$0x3]  ;;  %v1020_v11 = vld [vmem:[%s1310_s3 + $0x18] sm:$0xff]  ;;  %v1018_v13 = vld [vmem:[%s1310_s3 + $0x8] sm:$0xff] }
  0x20   :  { %489 = vmatpush.bf16.msra.mxu2 %v984_v36  ;;  %v670_v5 = vunpack.c.l.b16 %v640_v4  ;;  %v1019_v12 = vld [vmem:[%s1310_s3 + $0x10] sm:$0xff]  ;;  %v1017_v16 = vld [vmem:[%s1310_s3] sm:$0xff]  ;;  %v1028_v19 = vld [vmem:[%s1312_s5 + $0x28] sm:$0xff] }
  0x21   :  { %464 = vmatmul.bf16.vlgmr.msra.gmra.mxu0 %v49_v38  ;;  %502 = vmatpush.bf16.msra.mxu3 %v992_v40  ;;  %v598_v3 = vpack.c.b16 %v591_v2, %v591_v2  ;;  %v1027_v22 = vld [vmem:[%s1312_s5 + $0x20] sm:$0xff]  ;;  %v1026_v24 = vld [vmem:[%s1312_s5 + $0x18] sm:$0xff]  ;;  %v1025_v28 = vld [vmem:[%s1312_s5 + $0x10] sm:$0xff] }
  0x22   :  { %508 = vmatpush.bf16.msrb.mxu0 %v1007_v34  ;;  %477 = vmatmul.bf16.vlgmr.msra.gmra.mxu1 %v50_v39  ;;  %v677_v7 = vpack.c.b16 %v670_v5, %v670_v5  ;;  %v1030_v23 = vld [vmem:[%s1309_s2] ss:$0 sm:$0xff] }
  0x23   :  { %521 = vmatpush.bf16.msrb.mxu1 %v1015_v35  ;;  %490 = vmatmul.bf16.vlgmr.msra.gmra.mxu2 %v51_v45  ;;  %v611_v6 = vsel %vm609_vm1, %v598_v3, 0  ;;  %v1031_v45 = vld [vmem:[%s1311_s4] ss:$0 sm:$0xff] }
  0x24   :  { %541 = vmatpush.bf16.msrb.mxu2 %v1016_v41  ;;  %503 = vmatmul.bf16.vlgmr.msra.gmra.mxu3 %v52_v46  ;;  %v688_v8 = vsel %vm609_vm1, %v677_v7, 0 }
  0x25   :  { %614 = vmatpush.bf16.msrb.mxu3 %v611_v6 }
  0x26   :  { %509 = vmatpush.bf16.msrb.mxu0 %v1006_v43  ;;  %v1024_v43 = vld [vmem:[%s1312_s5 + $0x8] sm:$0xff] }
  0x27   :  { %522 = vmatpush.bf16.msrb.mxu1 %v1014_v44  ;;  %v1023_v44 = vld [vmem:[%s1312_s5] sm:$0xff]  ;;  %s712_s5 = sshll.u32 %s1314_s7, 4  ;;  %s713_s5 = int_to_ptr.hbm [resolvable:$true] %s712_s5 }
  0x28   :  { %691 = vmatpush.bf16.msra.mxu2 %v688_v8 }
  0x29   :  { %615 = vmatpush.bf16.msrb.mxu3 %v1022_v9 }
  0x2a   :  { %510 = vmatpush.bf16.msrb.mxu0 %v1005_v47 }
  0x2b   :  { %523 = vmatpush.bf16.msrb.mxu1 %v1013_v48 }
  0x2c   :  { %692 = vmatpush.bf16.msra.mxu2 %v1028_v19 }
  0x2d   :  { %616 = vmatpush.bf16.msrb.mxu3 %v1021_v10 }
  0x2e   :  { %511 = vmatpush.bf16.msrb.mxu0 %v1004_v49 }
  0x2f   :  { %524 = vmatpush.bf16.msrb.mxu1 %v1012_v50 }
  0x30   :  { %693 = vmatpush.bf16.msra.mxu2 %v1027_v22 }
  0x31   :  { %617 = vmatpush.bf16.msrb.mxu3 %v1020_v11 }
  0x32   :  { %512 = vmatpush.bf16.msrb.mxu0 %v1003_v51  ;;  %v1032_v51 = vld [vmem:[%s1313_s6] ss:$0 sm:$0xff] }
  0x33   :  { %525 = vmatpush.bf16.msrb.mxu1 %v1011_v52  ;;  %917 = vmatmul.msk.bf16.vlgmr.msrb.gmra.mxu2 %vm452_vm0, %v55_v56 }
  0x34   :  { %694 = vmatpush.bf16.msra.mxu2 %v1026_v24 }
  0x35   :  { %618 = vmatpush.bf16.msrb.mxu3 %v1019_v12 }
  0x36   :  { %513 = vmatpush.bf16.msrb.mxu0 %v1002_v54 }
  0x37   :  { %526 = vmatpush.bf16.msrb.mxu1 %v1010_v55 }
  0x38   :  { %695 = vmatpush.bf16.msra.mxu2 %v1025_v28 }
  0x39   :  { %619 = vmatpush.bf16.msrb.mxu3 %v1018_v13 }
  0x3a   :  { %514 = vmatpush.bf16.msrb.mxu0 %v1001_v57 }
  0x3b   :  { %527 = vmatpush.bf16.msrb.mxu1 %v1009_v58 }
  0x3c   :  { %696 = vmatpush.bf16.msra.mxu2 %v1024_v43 }
  0x3d   :  { %620 = vmatpush.bf16.msrb.mxu3 %v1017_v16 }
  0x3e   :  { %515 = vmatpush.bf16.msrb.mxu0 %v1000_v59 }
  0x3f   :  { %528 = vmatpush.bf16.msrb.mxu1 %v1008_v60 }
  0x40   :  { %697 = vmatpush.bf16.msra.mxu2 %v1023_v44 }
  0x41   :  { %516 = vmatmul.bf16.vlgmr.msrb.gmra.mxu0 %v53_v63 }
  0x42   :  { %529 = vmatmul.bf16.vlgmr.msrb.gmra.mxu1 %v54_v0 }
  0x9e   :  { %v465_v14 = vpop.f32.mrf.mxu0 }
  0x9f   :  { %v478_v15 = vpop.f32.mrf.mxu1  ;;  %v466_v25 = vadd.f32 %v1030_v23, %v465_v14 }
  0xa1   :  { %v479_v29 = vadd.f32 %v478_v15, %v466_v25 }
  0xa6   :  { %v467_v17 = vpop.f32.mrf.mxu0  ;;  %v491_v20 = vpop.f32.mrf.mxu2 }
  0xa7   :  { %v480_v18 = vpop.f32.mrf.mxu1  ;;  %v504_v21 = vpop.f32.mrf.mxu3  ;;  %v492_v30 = vadd.f32 %v491_v20, %v479_v29 }
  0xa9   :  { %v505_v32 = vadd.f32 %v504_v21, %v492_v30 }
  0xae   :  { %v493_v26 = vpop.f32.mrf.mxu2 }
  0xaf   :  { %v506_v27 = vpop.f32.mrf.mxu3 }
  0xb6   :  { %v543_v31 = vpop.f32.mrf.mxu2 }
  0xbe   :  { %v517_v33 = vpop.f32.mrf.mxu0  ;;  %v545_v37 = vpop.f32.mrf.mxu2 }
  0xbf   :  { %v530_v34 = vpop.f32.mrf.mxu1  ;;  %v518_v35 = vadd.f32 %v517_v33, %v505_v32 }
  0xc1   :  { %v531_v36 = vadd.f32 %v530_v34, %v518_v35 }
  0xc3   :  { %v544_v38 = vadd.f32 %v543_v31, %v531_v36 }
  0xc5   :  { %v547_v39 = vmax.f32 %v544_v38, 0.0 }
  0xc6   :  { %v519_v40 = vpop.f32.mrf.mxu0 }
  0xc7   :  { %v532_v41 = vpop.f32.mrf.mxu1  ;;  %v548_v42 = vpack.c.bf16 %v547_v39, %v547_v39 }
  0xc9   :  { %942 = vmatmul.msk.bf16.vlgmr.msrb.gmra.mxu3 %vm605_vm2, %v548_v42 }
 0x14c   :  { %v622_v46 = vpop.f32.mrf.mxu3 }
 0x14d   :  { %v623_v47 = vadd.f32 %v1031_v45, %v622_v46 }
 0x14f   :  { %v626_v48 = vmax.f32 %v623_v47, 0.0 }
 0x151   :  { %v627_v49 = vpack.c.bf16 %v626_v48, %v626_v48 }
 0x153   :  { %967 = vmatmul.msk.bf16.vlgmr.msra.gmra.mxu2 %vm605_vm2, %v627_v49 }
 0x154   :  { %v624_v50 = vpop.f32.mrf.mxu3 }
 0x1d6   :  { %v699_v52 = vpop.f32.mrf.mxu2 }
 0x1d7   :  { %v700_v53 = vadd.f32 %v1032_v51, %v699_v52 }
 0x1d9   :  { %704 = vst.msk [vmem:[#allocation2] sm:$0x3] %vm703_vm3, %v700_v53 }
 0x1da   :  { %715 = dma.vmem_to_hbm [thread:$0]  %s711_s15, 32, %s713_s5, [#allocation3]  }
 0x1de   :  { %v701_v54 = vpop.f32.mrf.mxu2 }
 0x1df   :  { %1057 = dma.done.wait [#allocation3], 32  }
 0x1e0   :  { %1058 = vsyncadd [#allocation3], 4294967264 }
 0x1e1   :  { %720 = vsyncpa [#allocation3], 1 }

</bundles_post_ra>
